<compile_context>
chip_gen: v7x
topology: tpu7x:2x2x1
jax: 0.10.0
libtpu: 0.0.40
codegen_flags: <defaults>
</compile_context>

<pallas_src>
import math

import jax
import jax.numpy as jnp
from jax.experimental import pallas as pl
from jax.experimental.pallas import tpu as pltpu


def _pos_enc_kernel(x_ref, pe_ref, o_ref):
    # x_ref / o_ref: (TB, TL) tile of the flattened (B, S*D) activation.
    # pe_ref:        (1, TL) tile of the flattened positional-encoding row; the
    #                broadcast over batch rows is implicit jnp broadcasting (no
    #                explicit expand / broadcast_in_dim materialised in VMEM).
    o_ref[...] = x_ref[...] + pe_ref[...]


def make_sinusoidal_pe(max_len: int, d_model: int) -> jnp.ndarray:
    """Deterministic sinusoidal positional-encoding table, shape (max_len, d_model)."""
    position = jnp.arange(max_len, dtype=jnp.float32)[:, None]            # (max_len, 1)
    div_term = jnp.exp(
        jnp.arange(0, d_model, 2, dtype=jnp.float32) * (-math.log(10000.0) / d_model)
    )                                                                      # (d_model/2,)
    pe = jnp.zeros((max_len, d_model), dtype=jnp.float32)
    pe = pe.at[:, 0::2].set(jnp.sin(position * div_term))
    pe = pe.at[:, 1::2].set(jnp.cos(position * div_term))
    return pe


def _pick_tile(extent: int, target: int, quantum: int) -> int:
    """Largest t <= target with t % quantum == 0 and extent % t == 0, else extent.

    Falling back to the full extent is always legal for a BlockSpec dim
    (block dim == full array dim), so no ragged tiles / masking are ever needed.
    """
    if extent <= target:
        return extent
    t = (target // quantum) * quantum
    while t >= quantum:
        if extent % t == 0:
            return t
        t -= quantum
    return extent


@jax.jit
def positional_encoding(x: jnp.ndarray, pe_table: jnp.ndarray) -> jnp.ndarray:
    """x: (B, S, D). Returns x + pe_table[:S] (eval-mode dropout = identity)."""
    B, S, D = x.shape
    max_len, d_model = pe_table.shape
    assert d_model == D, "pe_table d_model mismatch"
    assert S <= max_len, "seq_len exceeds max_len"

    flat = S * D
    # Free (inside jit) layout plumbing: lane-dense 2-D view of the activation.
    x2d = x.reshape(B, flat)
    # One tiny (S*D)-element slice/flatten/cast of the table — negligible next to the
    # B*S*D activation traffic, and it keeps every BlockSpec dim legal for any S, D.
    pe2d = pe_table[:S].reshape(1, flat).astype(x.dtype)

    tl = _pick_tile(flat, target=2048, quantum=128)   # lane tile (last dim)
    tb = _pick_tile(B, target=128, quantum=8)         # batch-row tile (sublane dim)
    n_lane = flat // tl
    n_batch = B // tb

    out2d = pl.pallas_call(
        _pos_enc_kernel,
        out_shape=jax.ShapeDtypeStruct((B, flat), x.dtype),
        # Batch axis innermost -> the PE tile's block index is constant across it,
        # so the PE block is fetched from HBM once per lane tile (amortised over B).
        grid=(n_lane, n_batch),
        in_specs=[
            pl.BlockSpec((tb, tl), lambda l, b: (b, l)),   # x
            pl.BlockSpec((1, tl), lambda l, b: (0, l)),    # pe (resident across batch)
        ],
        out_specs=pl.BlockSpec((tb, tl), lambda l, b: (b, l)),
        input_output_aliases={0: 0},                       # in-place add on the x slab
        compiler_params=pltpu.CompilerParams(
            dimension_semantics=("parallel", "parallel"),
        ),
    )(x2d, pe2d)

    return out2d.reshape(B, S, D)


if __name__ == "__main__":
    # Small shapes consistent with the module's forward: [batch, seq_len, d_model]
    batch, seq_len, d_model, max_len = 2, 8, 32, 64

    key = jax.random.PRNGKey(0)
    x = jax.random.normal(key, (batch, seq_len, d_model), dtype=jnp.float32)

    pe_table = make_sinusoidal_pe(max_len, d_model)

    out = jax.block_until_ready(positional_encoding(x, pe_table))

    # Sanity check against pure-JAX reference.
    ref = x + pe_table[None, :seq_len, :]
    assert out.shape == (batch, seq_len, d_model)
    assert jnp.allclose(out, ref, atol=1e-6), "mismatch vs reference"

    print("KERNEL_OK")
</pallas_src>

<mosaic_0001>
module attributes {stable_mosaic.version = 11 : i64} {
  func.func @_pos_enc_kernel(%arg0: i32, %arg1: i32, %arg2: memref<2x256xf32, #tpu.memory_space<vmem>>, %arg3: memref<1x256xf32, #tpu.memory_space<vmem>>, %arg4: memref<2x256xf32, #tpu.memory_space<vmem>>) attributes {dimension_semantics = [#tpu.dimension_semantics<parallel>, #tpu.dimension_semantics<parallel>], iteration_bounds = array<i64: 1, 1>, scalar_prefetch = 0 : i64, scratch_operands = 0 : i64, tpu.core_type = #tpu.core_type<tc>, window_params = [{transform_indices = @transform_0, window_bounds = array<i64: 2, 256>}, {transform_indices = @transform_1, window_bounds = array<i64: 1, 256>}, {transform_indices = @transform_2, window_bounds = array<i64: 2, 256>}]} {
    %c0 = arith.constant 0 : index
    %c0_0 = arith.constant 0 : index
    %0 = vector.load %arg2[%c0, %c0_0] : memref<2x256xf32, #tpu.memory_space<vmem>>, vector<2x256xf32>
    %c0_1 = arith.constant 0 : index
    %c0_2 = arith.constant 0 : index
    %1 = vector.load %arg3[%c0_1, %c0_2] : memref<1x256xf32, #tpu.memory_space<vmem>>, vector<1x256xf32>
    %2 = vector.broadcast %1 : vector<1x256xf32> to vector<2x256xf32>
    %3 = arith.addf %0, %2 : vector<2x256xf32>
    %c0_3 = arith.constant 0 : index
    %c0_4 = arith.constant 0 : index
    %4 = vector.load %arg4[%c0_3, %c0_4] : memref<2x256xf32, #tpu.memory_space<vmem>>, vector<2x256xf32>
    tpu.vector_store %arg4[%c0_3, %c0_4], %3 {strides = array<i32>} : memref<2x256xf32, #tpu.memory_space<vmem>>, vector<2x256xf32>,
    return
  }
  func.func @transform_0(%arg0: i32, %arg1: i32) -> (i32, i32) {
    %c0_i32 = arith.constant 0 : i32
    return %arg1, %arg0 : i32, i32
  }
  func.func @transform_1(%arg0: i32, %arg1: i32) -> (i32, i32) {
    %c0_i32 = arith.constant 0 : i32
    %c0_i32_0 = arith.constant 0 : i32
    return %c0_i32, %arg0 : i32, i32
  }
  func.func @transform_2(%arg0: i32, %arg1: i32) -> (i32, i32) {
    %c0_i32 = arith.constant 0 : i32
    return %arg1, %arg0 : i32, i32
  }
}

</mosaic_0001>

<bundles_post_ra>
// kernel: positional_encoding.1
= control target key start
LH: loop header
LB: loop body
LE: loop exit
PB: predicated region body
PF: predicated region fallthrough
CT: control target
= control target key end

     0   :  { %v14_v0 = vlaneseq  ;;  %v38_v1 = vmov 1983009808   ;;  %s63_s1 = inlined_call_operand.vmem [shape: f32[1,256], index: 1, kind: input, shape index: {}]   ;;  %s64_s0 = inlined_call_operand.vmem [shape: f32[2,256], index: 0, kind: input, shape index: {}, may-alias: {0,2}]   ;;  %s65_s2 = inlined_call_operand.vmem [shape: f32[2,256], index: 2, kind: output, shape index: {}, may-alias: {0,2}]  }
   0x1   :  { %v24_v2 = vunpack.c.l.s4 %v38_v1  ;;  %v12_v4 = vld [vmem:[%s63_s1] sm:$0x3] }
   0x2   :  { %v15_v3 = vshrl.u32 %v14_v0, 7  ;;  %v11_v12 = vld [vmem:[%s64_s0] sm:$0xf] }
   0x3   :  { %v25_v5 = vunpack.c.0.s8 %v24_v2 }
   0x4   :  { %v16_v6 = vsub.s32 0, %v15_v3  ;;  %v20_v7 = vsub.s32 1, %v15_v3 }
   0x5   :  { %v28_v10 = vsub.s32 %v25_v5, %v15_v3 }
   0x6   :  { %v17_v8 = vrot.slane %v12_v4, %v16_v6  ;;  %v21_v9 = vrot.slane %v12_v4, %v20_v7 }
   0x8   :  { %v22_v11 = vcombine.low %v17_v8, %v21_v9 }
   0xa   :  { %v29_v13 = vrot.slane %v22_v11, %v28_v10 }
   0xc   :  { %v31_v14 = vadd.f32 %v29_v13, %v11_v12 }
   0xe   :  { %32 = vst [vmem:[%s65_s2] sm:$0xf] %v31_v14 }

</bundles_post_ra>
